<compile_context>
chip_gen: v6e
topology: v6e:2x2x1
jax: 0.10.0
libtpu: 0.0.40
codegen_flags: <defaults>
</compile_context>

<pallas_src>
import functools

import jax
import jax.numpy as jnp
from jax.experimental import pallas as pl
from jax.experimental.pallas import tpu as pltpu


def dim_rnn_kernel(x2d_ref, wih_ref, whh_ref, b_ref, wl1_ref, bl1_ref, out_ref,
                   *, B, T):
    """x2d_ref: (B*T, E) f32.  wih_ref: (E, H) bf16.  whh_ref: (H, H) bf16.
    b_ref: (1, H) f32 (b_ih + b_hh).  wl1_ref: (H, D) bf16.  bl1_ref: (1, D) f32."""
    H = whh_ref.shape[1]

    # Hoisted loads: weights (bf16) and biases (f32) read once, reused every step.
    wih = wih_ref[...]                       # (E, H)  bf16
    whh = whh_ref[...]                       # (H, H)  bf16
    b = b_ref[...]                           # (1, H)  f32

    # Batched input projection for all B*T rows: one MXU pass + one bias broadcast.
    x_bf = x2d_ref[...].astype(jnp.bfloat16)                         # (B*T, E)
    xw_all = jnp.dot(x_bf, wih, preferred_element_type=jnp.float32) + b   # (B*T, H) f32

    # PyTorch: self.hidden initialized to zeros, then carried ACROSS batch elements.
    h = jnp.zeros((1, H), jnp.float32)
    h_rows = []

    for j in range(B):                       # statically unrolled (B*T = 16 steps)
        for t in range(T):
            rec = jnp.dot(h.astype(jnp.bfloat16), whh,
                          preferred_element_type=jnp.float32)        # (1, H)
            r = j * T + t
            h = jnp.tanh(xw_all[r:r + 1, :] + rec)                   # (1, H) f32
        h_rows.append(h)                     # hidden after sequence j

    # Batched final Linear: one (B,H)@(H,D) matmul + bias, single output store.
    hidden = jnp.concatenate(h_rows, axis=0)                         # (B, H) f32
    out = (jnp.dot(hidden.astype(jnp.bfloat16), wl1_ref[...],
                   preferred_element_type=jnp.float32)
           + bl1_ref[...])                                           # (B, D) f32
    out_ref[...] = out.astype(out_ref.dtype)


def prepare_dim_rnn_params(w_ih, w_hh, b_ih, b_hh, w_l1, b_l1):
    """One-time weight prep (transpose / combine / bf16 cast).  Cache and reuse the
    result across calls so these XLA ops stay off the per-invocation path."""
    H = w_ih.shape[0]
    D = w_l1.shape[0]
    return {
        "wih_t": jnp.asarray(w_ih.T, jnp.bfloat16),                    # (E, H)
        "whh_t": jnp.asarray(w_hh.T, jnp.bfloat16),                    # (H, H)
        "b": (b_ih + b_hh).reshape(1, H).astype(jnp.float32),          # (1, H)
        "wl1_t": jnp.asarray(w_l1.T, jnp.bfloat16),                    # (H, D)
        "bl1": b_l1.reshape(1, D).astype(jnp.float32),                 # (1, D)
    }


def dim_rnn_forward(x, params):
    """x: (B, T, E) float32.  params: output of prepare_dim_rnn_params."""
    B, T, E = x.shape
    H = params["whh_t"].shape[0]
    D = params["wl1_t"].shape[1]

    x2d = x.reshape(B * T, E)            # contiguous reshape: metadata-only

    vmem_specs = [pl.BlockSpec(memory_space=pltpu.MemorySpace.VMEM) for _ in range(6)]

    return pl.pallas_call(
        functools.partial(dim_rnn_kernel, B=B, T=T),
        out_shape=jax.ShapeDtypeStruct((B, D), jnp.float32),
        in_specs=vmem_specs,                    # whole arrays resident in VMEM, no grid
        out_specs=pl.BlockSpec(memory_space=pltpu.MemorySpace.VMEM),
    )(x2d, params["wih_t"], params["whh_t"], params["b"],
      params["wl1_t"], params["bl1"])


def dim_rnn_reference(x, w_ih, w_hh, b_ih, b_hh, w_l1, b_l1,
                      matmul_dtype=jnp.float32):
    """Pure-JAX replica of the PyTorch forward (hidden carried across batch
    elements).  matmul_dtype lets the check mirror the kernel's bf16 MXU operands."""
    B, T, _ = x.shape
    H = w_ih.shape[0]
    cast = lambda a: a.astype(matmul_dtype)
    h = jnp.zeros((1, H), jnp.float32)
    rows = []
    for j in range(B):
        for t in range(T):
            pre = (jnp.dot(cast(x[j, t][None, :]), cast(w_ih.T),
                           preferred_element_type=jnp.float32) + b_ih
                   + jnp.dot(cast(h), cast(w_hh.T),
                             preferred_element_type=jnp.float32) + b_hh)
            h = jnp.tanh(pre)
        rows.append(h[0])
    hidden = jnp.stack(rows, axis=0)                                   # (B, H)
    return (jnp.dot(cast(hidden), cast(w_l1.T),
                    preferred_element_type=jnp.float32) + b_l1)        # (B, D)


if __name__ == "__main__":
    # Sizes implied by the module: ent_features, dim_features, hidden_size.
    B, T = 2, 8
    ent_features, dim_features, hidden_size = 4, 4, 32

    key = jax.random.PRNGKey(0)
    ks = jax.random.split(key, 7)
    k_rnn = 1.0 / jnp.sqrt(hidden_size)       # PyTorch nn.RNN init scale
    k_l1 = 1.0 / jnp.sqrt(hidden_size)        # PyTorch nn.Linear init scale

    x = jax.random.normal(ks[0], (B, T, ent_features), jnp.float32)
    w_ih = jax.random.uniform(ks[1], (hidden_size, ent_features), jnp.float32, -k_rnn, k_rnn)
    w_hh = jax.random.uniform(ks[2], (hidden_size, hidden_size), jnp.float32, -k_rnn, k_rnn)
    b_ih = jax.random.uniform(ks[3], (hidden_size,), jnp.float32, -k_rnn, k_rnn)
    b_hh = jax.random.uniform(ks[4], (hidden_size,), jnp.float32, -k_rnn, k_rnn)
    w_l1 = jax.random.uniform(ks[5], (dim_features, hidden_size), jnp.float32, -k_l1, k_l1)
    b_l1 = jax.random.uniform(ks[6], (dim_features,), jnp.float32, -k_l1, k_l1)

    # Weight prep happens once, outside the per-call path.
    params = prepare_dim_rnn_params(w_ih, w_hh, b_ih, b_hh, w_l1, b_l1)

    out = dim_rnn_forward(x, params)
    out = jax.block_until_ready(out)
    assert out.shape == (B, dim_features), out.shape

    # Apples-to-apples check (reference mirrors bf16 MXU operands): tight tolerance.
    ref_bf16 = dim_rnn_reference(x, w_ih, w_hh, b_ih, b_hh, w_l1, b_l1,
                                 matmul_dtype=jnp.bfloat16)
    assert jnp.allclose(out, ref_bf16, atol=5e-3, rtol=5e-3), (out, ref_bf16)

    # Semantics check vs the full-f32 reference: loosened per review for bf16 operands.
    ref_f32 = dim_rnn_reference(x, w_ih, w_hh, b_ih, b_hh, w_l1, b_l1,
                                matmul_dtype=jnp.float32)
    assert jnp.allclose(out, ref_f32, atol=5e-2, rtol=5e-2), (out, ref_f32)

    print("KERNEL_OK")
</pallas_src>

<mosaic_0001>
module attributes {stable_mosaic.version = 11 : i64} {
  func.func @dim_rnn_kernel(%arg0: memref<16x4xf32, #tpu.memory_space<vmem>>, %arg1: memref<4x32xbf16, #tpu.memory_space<vmem>>, %arg2: memref<32x32xbf16, #tpu.memory_space<vmem>>, %arg3: memref<1x32xf32, #tpu.memory_space<vmem>>, %arg4: memref<32x4xbf16, #tpu.memory_space<vmem>>, %arg5: memref<1x4xf32, #tpu.memory_space<vmem>>, %arg6: memref<2x4xf32, #tpu.memory_space<vmem>>) attributes {dimension_semantics = [], scalar_prefetch = 0 : i64, scratch_operands = 0 : i64, tpu.core_type = #tpu.core_type<tc>} {
    %c0 = arith.constant 0 : index
    %c0_0 = arith.constant 0 : index
    %0 = vector.load %arg1[%c0, %c0_0] : memref<4x32xbf16, #tpu.memory_space<vmem>>, vector<4x32xbf16>
    %c0_1 = arith.constant 0 : index
    %c0_2 = arith.constant 0 : index
    %1 = vector.load %arg2[%c0_1, %c0_2] : memref<32x32xbf16, #tpu.memory_space<vmem>>, vector<32x32xbf16>
    %c0_3 = arith.constant 0 : index
    %c0_4 = arith.constant 0 : index
    %2 = vector.load %arg3[%c0_3, %c0_4] : memref<1x32xf32, #tpu.memory_space<vmem>>, vector<1x32xf32>
    %c0_5 = arith.constant 0 : index
    %c0_6 = arith.constant 0 : index
    %3 = vector.load %arg0[%c0_5, %c0_6] : memref<16x4xf32, #tpu.memory_space<vmem>>, vector<16x4xf32>
    %4 = arith.truncf %3 : vector<16x4xf32> to vector<16x4xbf16>
    %cst = arith.constant dense<0.000000e+00> : vector<16x32xf32>
    %5 = tpu.matmul %4, %0, %cst {dimension_numbers = #tpu.dot_dimension_numbers<[1], [0], [0], [1], [0, 0, 1, 1], [], []>} : vector<16x4xbf16>, vector<4x32xbf16>, vector<16x32xf32> -> vector<16x32xf32>
    %6 = vector.broadcast %2 : vector<1x32xf32> to vector<16x32xf32>
    %7 = arith.addf %5, %6 : vector<16x32xf32>
    %cst_7 = arith.constant 0.000000e+00 : f32
    %8 = vector.broadcast %cst_7 : f32 to vector<1x32xf32>
    %9 = arith.truncf %8 : vector<1x32xf32> to vector<1x32xbf16>
    %cst_8 = arith.constant dense<0.000000e+00> : vector<1x32xf32>
    %10 = tpu.matmul %9, %1, %cst_8 {dimension_numbers = #tpu.dot_dimension_numbers<[1], [0], [0], [1], [0, 0, 1, 1], [], []>} : vector<1x32xbf16>, vector<32x32xbf16>, vector<1x32xf32> -> vector<1x32xf32>
    %11 = vector.extract_strided_slice %7 {offsets = [0, 0], sizes = [1, 32], strides = [1, 1]} : vector<16x32xf32> to vector<1x32xf32>
    %12 = arith.addf %11, %10 : vector<1x32xf32>
    %13 = math.tanh %12 : vector<1x32xf32>
    %14 = arith.truncf %13 : vector<1x32xf32> to vector<1x32xbf16>
    %cst_9 = arith.constant dense<0.000000e+00> : vector<1x32xf32>
    %15 = tpu.matmul %14, %1, %cst_9 {dimension_numbers = #tpu.dot_dimension_numbers<[1], [0], [0], [1], [0, 0, 1, 1], [], []>} : vector<1x32xbf16>, vector<32x32xbf16>, vector<1x32xf32> -> vector<1x32xf32>
    %16 = vector.extract_strided_slice %7 {offsets = [1, 0], sizes = [1, 32], strides = [1, 1]} : vector<16x32xf32> to vector<1x32xf32>
    %17 = arith.addf %16, %15 : vector<1x32xf32>
    %18 = math.tanh %17 : vector<1x32xf32>
    %19 = arith.truncf %18 : vector<1x32xf32> to vector<1x32xbf16>
    %cst_10 = arith.constant dense<0.000000e+00> : vector<1x32xf32>
    %20 = tpu.matmul %19, %1, %cst_10 {dimension_numbers = #tpu.dot_dimension_numbers<[1], [0], [0], [1], [0, 0, 1, 1], [], []>} : vector<1x32xbf16>, vector<32x32xbf16>, vector<1x32xf32> -> vector<1x32xf32>
    %21 = vector.extract_strided_slice %7 {offsets = [2, 0], sizes = [1, 32], strides = [1, 1]} : vector<16x32xf32> to vector<1x32xf32>
    %22 = arith.addf %21, %20 : vector<1x32xf32>
    %23 = math.tanh %22 : vector<1x32xf32>
    %24 = arith.truncf %23 : vector<1x32xf32> to vector<1x32xbf16>
    %cst_11 = arith.constant dense<0.000000e+00> : vector<1x32xf32>
    %25 = tpu.matmul %24, %1, %cst_11 {dimension_numbers = #tpu.dot_dimension_numbers<[1], [0], [0], [1], [0, 0, 1, 1], [], []>} : vector<1x32xbf16>, vector<32x32xbf16>, vector<1x32xf32> -> vector<1x32xf32>
    %26 = vector.extract_strided_slice %7 {offsets = [3, 0], sizes = [1, 32], strides = [1, 1]} : vector<16x32xf32> to vector<1x32xf32>
    %27 = arith.addf %26, %25 : vector<1x32xf32>
    %28 = math.tanh %27 : vector<1x32xf32>
    %29 = arith.truncf %28 : vector<1x32xf32> to vector<1x32xbf16>
    %cst_12 = arith.constant dense<0.000000e+00> : vector<1x32xf32>
    %30 = tpu.matmul %29, %1, %cst_12 {dimension_numbers = #tpu.dot_dimension_numbers<[1], [0], [0], [1], [0, 0, 1, 1], [], []>} : vector<1x32xbf16>, vector<32x32xbf16>, vector<1x32xf32> -> vector<1x32xf32>
    %31 = vector.extract_strided_slice %7 {offsets = [4, 0], sizes = [1, 32], strides = [1, 1]} : vector<16x32xf32> to vector<1x32xf32>
    %32 = arith.addf %31, %30 : vector<1x32xf32>
    %33 = math.tanh %32 : vector<1x32xf32>
    %34 = arith.truncf %33 : vector<1x32xf32> to vector<1x32xbf16>
    %cst_13 = arith.constant dense<0.000000e+00> : vector<1x32xf32>
    %35 = tpu.matmul %34, %1, %cst_13 {dimension_numbers = #tpu.dot_dimension_numbers<[1], [0], [0], [1], [0, 0, 1, 1], [], []>} : vector<1x32xbf16>, vector<32x32xbf16>, vector<1x32xf32> -> vector<1x32xf32>
    %36 = vector.extract_strided_slice %7 {offsets = [5, 0], sizes = [1, 32], strides = [1, 1]} : vector<16x32xf32> to vector<1x32xf32>
    %37 = arith.addf %36, %35 : vector<1x32xf32>
    %38 = math.tanh %37 : vector<1x32xf32>
    %39 = arith.truncf %38 : vector<1x32xf32> to vector<1x32xbf16>
    %cst_14 = arith.constant dense<0.000000e+00> : vector<1x32xf32>
    %40 = tpu.matmul %39, %1, %cst_14 {dimension_numbers = #tpu.dot_dimension_numbers<[1], [0], [0], [1], [0, 0, 1, 1], [], []>} : vector<1x32xbf16>, vector<32x32xbf16>, vector<1x32xf32> -> vector<1x32xf32>
    %41 = vector.extract_strided_slice %7 {offsets = [6, 0], sizes = [1, 32], strides = [1, 1]} : vector<16x32xf32> to vector<1x32xf32>
    %42 = arith.addf %41, %40 : vector<1x32xf32>
    %43 = math.tanh %42 : vector<1x32xf32>
    %44 = arith.truncf %43 : vector<1x32xf32> to vector<1x32xbf16>
    %cst_15 = arith.constant dense<0.000000e+00> : vector<1x32xf32>
    %45 = tpu.matmul %44, %1, %cst_15 {dimension_numbers = #tpu.dot_dimension_numbers<[1], [0], [0], [1], [0, 0, 1, 1], [], []>} : vector<1x32xbf16>, vector<32x32xbf16>, vector<1x32xf32> -> vector<1x32xf32>
    %46 = vector.extract_strided_slice %7 {offsets = [7, 0], sizes = [1, 32], strides = [1, 1]} : vector<16x32xf32> to vector<1x32xf32>
    %47 = arith.addf %46, %45 : vector<1x32xf32>
    %48 = math.tanh %47 : vector<1x32xf32>
    %49 = arith.truncf %48 : vector<1x32xf32> to vector<1x32xbf16>
    %cst_16 = arith.constant dense<0.000000e+00> : vector<1x32xf32>
    %50 = tpu.matmul %49, %1, %cst_16 {dimension_numbers = #tpu.dot_dimension_numbers<[1], [0], [0], [1], [0, 0, 1, 1], [], []>} : vector<1x32xbf16>, vector<32x32xbf16>, vector<1x32xf32> -> vector<1x32xf32>
    %51 = vector.extract_strided_slice %7 {offsets = [8, 0], sizes = [1, 32], strides = [1, 1]} : vector<16x32xf32> to vector<1x32xf32>
    %52 = arith.addf %51, %50 : vector<1x32xf32>
    %53 = math.tanh %52 : vector<1x32xf32>
    %54 = arith.truncf %53 : vector<1x32xf32> to vector<1x32xbf16>
    %cst_17 = arith.constant dense<0.000000e+00> : vector<1x32xf32>
    %55 = tpu.matmul %54, %1, %cst_17 {dimension_numbers = #tpu.dot_dimension_numbers<[1], [0], [0], [1], [0, 0, 1, 1], [], []>} : vector<1x32xbf16>, vector<32x32xbf16>, vector<1x32xf32> -> vector<1x32xf32>
    %56 = vector.extract_strided_slice %7 {offsets = [9, 0], sizes = [1, 32], strides = [1, 1]} : vector<16x32xf32> to vector<1x32xf32>
    %57 = arith.addf %56, %55 : vector<1x32xf32>
    %58 = math.tanh %57 : vector<1x32xf32>
    %59 = arith.truncf %58 : vector<1x32xf32> to vector<1x32xbf16>
    %cst_18 = arith.constant dense<0.000000e+00> : vector<1x32xf32>
    %60 = tpu.matmul %59, %1, %cst_18 {dimension_numbers = #tpu.dot_dimension_numbers<[1], [0], [0], [1], [0, 0, 1, 1], [], []>} : vector<1x32xbf16>, vector<32x32xbf16>, vector<1x32xf32> -> vector<1x32xf32>
    %61 = vector.extract_strided_slice %7 {offsets = [10, 0], sizes = [1, 32], strides = [1, 1]} : vector<16x32xf32> to vector<1x32xf32>
    %62 = arith.addf %61, %60 : vector<1x32xf32>
    %63 = math.tanh %62 : vector<1x32xf32>
    %64 = arith.truncf %63 : vector<1x32xf32> to vector<1x32xbf16>
    %cst_19 = arith.constant dense<0.000000e+00> : vector<1x32xf32>
    %65 = tpu.matmul %64, %1, %cst_19 {dimension_numbers = #tpu.dot_dimension_numbers<[1], [0], [0], [1], [0, 0, 1, 1], [], []>} : vector<1x32xbf16>, vector<32x32xbf16>, vector<1x32xf32> -> vector<1x32xf32>
    %66 = vector.extract_strided_slice %7 {offsets = [11, 0], sizes = [1, 32], strides = [1, 1]} : vector<16x32xf32> to vector<1x32xf32>
    %67 = arith.addf %66, %65 : vector<1x32xf32>
    %68 = math.tanh %67 : vector<1x32xf32>
    %69 = arith.truncf %68 : vector<1x32xf32> to vector<1x32xbf16>
    %cst_20 = arith.constant dense<0.000000e+00> : vector<1x32xf32>
    %70 = tpu.matmul %69, %1, %cst_20 {dimension_numbers = #tpu.dot_dimension_numbers<[1], [0], [0], [1], [0, 0, 1, 1], [], []>} : vector<1x32xbf16>, vector<32x32xbf16>, vector<1x32xf32> -> vector<1x32xf32>
    %71 = vector.extract_strided_slice %7 {offsets = [12, 0], sizes = [1, 32], strides = [1, 1]} : vector<16x32xf32> to vector<1x32xf32>
    %72 = arith.addf %71, %70 : vector<1x32xf32>
    %73 = math.tanh %72 : vector<1x32xf32>
    %74 = arith.truncf %73 : vector<1x32xf32> to vector<1x32xbf16>
    %cst_21 = arith.constant dense<0.000000e+00> : vector<1x32xf32>
    %75 = tpu.matmul %74, %1, %cst_21 {dimension_numbers = #tpu.dot_dimension_numbers<[1], [0], [0], [1], [0, 0, 1, 1], [], []>} : vector<1x32xbf16>, vector<32x32xbf16>, vector<1x32xf32> -> vector<1x32xf32>
    %76 = vector.extract_strided_slice %7 {offsets = [13, 0], sizes = [1, 32], strides = [1, 1]} : vector<16x32xf32> to vector<1x32xf32>
    %77 = arith.addf %76, %75 : vector<1x32xf32>
    %78 = math.tanh %77 : vector<1x32xf32>
    %79 = arith.truncf %78 : vector<1x32xf32> to vector<1x32xbf16>
    %cst_22 = arith.constant dense<0.000000e+00> : vector<1x32xf32>
    %80 = tpu.matmul %79, %1, %cst_22 {dimension_numbers = #tpu.dot_dimension_numbers<[1], [0], [0], [1], [0, 0, 1, 1], [], []>} : vector<1x32xbf16>, vector<32x32xbf16>, vector<1x32xf32> -> vector<1x32xf32>
    %81 = vector.extract_strided_slice %7 {offsets = [14, 0], sizes = [1, 32], strides = [1, 1]} : vector<16x32xf32> to vector<1x32xf32>
    %82 = arith.addf %81, %80 : vector<1x32xf32>
    %83 = math.tanh %82 : vector<1x32xf32>
    %84 = arith.truncf %83 : vector<1x32xf32> to vector<1x32xbf16>
    %cst_23 = arith.constant dense<0.000000e+00> : vector<1x32xf32>
    %85 = tpu.matmul %84, %1, %cst_23 {dimension_numbers = #tpu.dot_dimension_numbers<[1], [0], [0], [1], [0, 0, 1, 1], [], []>} : vector<1x32xbf16>, vector<32x32xbf16>, vector<1x32xf32> -> vector<1x32xf32>
    %86 = vector.extract_strided_slice %7 {offsets = [15, 0], sizes = [1, 32], strides = [1, 1]} : vector<16x32xf32> to vector<1x32xf32>
    %87 = arith.addf %86, %85 : vector<1x32xf32>
    %88 = math.tanh %87 : vector<1x32xf32>
    %89 = tpu.concatenate %48, %88 in 0 : vector<1x32xf32>, vector<1x32xf32> -> vector<2x32xf32>
    %90 = arith.truncf %89 : vector<2x32xf32> to vector<2x32xbf16>
    %c0_24 = arith.constant 0 : index
    %c0_25 = arith.constant 0 : index
    %91 = vector.load %arg4[%c0_24, %c0_25] : memref<32x4xbf16, #tpu.memory_space<vmem>>, vector<32x4xbf16>
    %cst_26 = arith.constant dense<0.000000e+00> : vector<2x4xf32>
    %92 = tpu.matmul %90, %91, %cst_26 {dimension_numbers = #tpu.dot_dimension_numbers<[1], [0], [0], [1], [0, 0, 1, 1], [], []>} : vector<2x32xbf16>, vector<32x4xbf16>, vector<2x4xf32> -> vector<2x4xf32>
    %c0_27 = arith.constant 0 : index
    %c0_28 = arith.constant 0 : index
    %93 = vector.load %arg5[%c0_27, %c0_28] : memref<1x4xf32, #tpu.memory_space<vmem>>, vector<1x4xf32>
    %94 = vector.broadcast %93 : vector<1x4xf32> to vector<2x4xf32>
    %95 = arith.addf %92, %94 : vector<2x4xf32>
    %c0_29 = arith.constant 0 : index
    %c0_30 = arith.constant 0 : index
    %96 = vector.load %arg6[%c0_29, %c0_30] : memref<2x4xf32, #tpu.memory_space<vmem>>, vector<2x4xf32>
    tpu.vector_store %arg6[%c0_29, %c0_30], %95 {strides = array<i32>} : memref<2x4xf32, #tpu.memory_space<vmem>>, vector<2x4xf32>,
    return
  }
}

</mosaic_0001>

<bundles_post_ra>
// kernel: tpu_custom_call.1
= control target key start
LH: loop header
LB: loop body
LE: loop exit
PB: predicated region body
PF: predicated region fallthrough
CT: control target
= control target key end

     0   :  { %vm44_vm0 = vcmask 1041408   ;;  %v1288_v1 = vmov 0.0   ;;  %vm1289_vm1 = vmmov 0   ;;  %vm40_vm2 = vcmask 31744   ;;  %s1505_s0 = inlined_call_operand.vmem [shape: f32[16,4], index: 0, kind: input, shape index: {}]   ;;  %s1506_s1 = inlined_call_operand.vmem [shape: bf16[4,32], index: 1, kind: input, shape index: {}]   ;;  %s1507_s2 = inlined_call_operand.vmem [shape: bf16[32,32], index: 2, kind: input, shape index: {}]   ;;  %s1508_s3 = inlined_call_operand.vmem [shape: f32[1,32], index: 3, kind: input, shape index: {}]   ;;  %s1509_s4 = inlined_call_operand.vmem [shape: bf16[32,4], index: 4, kind: input, shape index: {}]   ;;  %s1510_s5 = inlined_call_operand.vmem [shape: f32[1,4], index: 5, kind: input, shape index: {}]   ;;  %s1511_s6 = inlined_call_operand.hbm [shape: f32[2,4], index: 6, kind: output, shape index: {}]  }
   0x1   :  { %v25_v0 = vld [vmem:[%s1506_s1] sm:$0x3]  ;;  %1084 = vmatprep.subr.bf16.mxu0 %v1288_v1  ;;  %1090 = vmatprep.subr.bf16.mxu1 %v1288_v1  ;;  %v1335_v3 = vld [vmem:[%s1507_s2 + $0x8] sm:$0xff]  }
   0x2   :  { %v46_v2 = vsel %vm44_vm0, %v25_v0, 0  ;;  %v31_v4 = vld [vmem:[%s1505_s0] sm:$0xff]  ;;  %1086 = vmatprep.mubr.msk.bf16.mxu0 %vm1289_vm1, %v1288_v1  ;;  %v32_v5 = vld [vmem:[%s1505_s0 + $0x8] sm:$0xff]  ;;  %1091 = vmatpush3.bf16.msra.mxu1 %v1335_v3 }
   0x3   :  { %1085 = vmatpush3.bf16.msra.mxu0 %v46_v2  ;;  %v33_v6 = vpack.c.bf16 %v32_v5, %v31_v4  ;;  %v1349_v7 = vld [vmem:[%s1507_s2] sm:$0xff]   ;;  %1094 = vmatprep.mubr.msk.bf16.mxu1 %vm1289_vm1, %v1288_v1 }
   0x4   :  { %1092 = vmatprep.subr.bf16.mxu1 %v1288_v1  ;;  %1098 = vmatprep.subr.bf16.mxu0 %v1288_v1 }
   0x6   :  { %1087 = vmatmul.mubr.msk.bf16.vlgmr.msra.gmra.mxu0 %vm40_vm2, %v33_v6 }
   0x7   :  { %11 = vsyncpa [#allocation3], 0  ;;  %1099 = vmatpush3.bf16.msra.mxu0 %v1335_v3  ;;  %1102 = vmatprep.mubr.msk.bf16.mxu0 %vm1289_vm1, %v1288_v1  ;;  %v1290_v8 = vmov 0   ;;  %v1008_v9 = vld [vmem:[%s1508_s3] ss:$0 sm:$0xff]  ;;  %vm101_vm3 = vcmask 261120  }
   0x8   :  { %1093 = vmatpush3.bf16.msra.mxu1 %v1349_v7  ;;  %1100 = vmatprep.subr.bf16.mxu0 %v1288_v1  ;;  %vm923_vm4 = vcmask 1040384   ;;  %s1291_s10 = smov [#allocation2]   ;;  %vm992_vm5 = vcmask 25600  }
   0x9   :  { %1106 = vmatprep.subr.bf16.mxu1 %v1288_v1  ;;  %s1000_s11 = sshll.u32 %s1291_s10, 4  ;;  %s1001_s11 = int_to_ptr.vmem [resolvable:$true] %s1000_s11 }
   0xa   :  { %s1266_s12 = scalar_lea.vmem %s1001_s11, 32  ;;  %p1271_p1 = scmp.lt.s32.totalorder %s1001_s11, %s1001_s11 }
   0xb   :  { %1095 = vmatmul.mubr.bf16.vlgmr.msra.gmra.mxu1 %v1290_v8  ;;  %1101 = vmatpush3.bf16.msra.mxu0 %v1349_v7  ;;  %p1267_p0 = scmp.ne.s32.totalorder %s1001_s11, %s1266_s12  ;;  %p1272_p2 = scmp.lt.s32.totalorder %s1266_s12, %s1266_s12 }
   0xc   :  { %1107 = vmatpush3.bf16.msra.mxu1 %v1335_v3  ;;  %1110 = vmatprep.mubr.msk.bf16.mxu1 %vm1289_vm1, %v1288_v1 }
   0xd   :  { %1108 = vmatprep.subr.bf16.mxu1 %v1288_v1  ;;  %1114 = vmatprep.subr.bf16.mxu0 %v1288_v1  ;;  %p1273_p3 = por %p1272_p2, %p1271_p1 }
   0xf   :  { %p1274_p4 = pnand %p1273_p3, %p1267_p0 }
  0x10   :  { %1109 = vmatpush3.bf16.msra.mxu1 %v1349_v7 }
  0x11   :  { %1122 = vmatprep.subr.bf16.mxu1 %v1288_v1 }
  0xc6   :  { %v82_v10 = vpop.f32.mrf.mxu0 }
  0xc7   :  { %v1372_v11 = vadd.f32 %v1008_v9, %v82_v10 }
  0xc8   :  { %v1088_v12 = vpop.f32.mrf.mxu0 }
  0xca   :  { %v85_v13 = vpop.f32.mrf.mxu0 }
  0xcb   :  { %v1374_v14 = vadd.f32 %v1008_v9, %v85_v13  ;;  %v139_v15 = vpop.f32.mrf.mxu1 }
  0xcc   :  { %v145_v16 = vadd.f32 %v139_v15, %v1372_v11  ;;  %v1089_v17 = vpop.f32.mrf.mxu0 }
  0xcd   :  { %v1096_v18 = vpop.f32.mrf.mxu1 }
  0xce   :  { %1234 = vtanh.f32 %v145_v16 }
  0xcf   :  { %v142_v19 = vpop.f32.mrf.mxu1 }
  0xd1   :  { %v1097_v20 = vpop.f32.mrf.mxu1 }
  0xdb   :  { %v1235_v21 = vpop.eup %1234 }
  0xdc   :  { %v147_v22 = vpack.c.bf16 %v1235_v21, %v1235_v21 }
  0xde   :  { %1103 = vmatmul.mubr.msk.bf16.vlgmr.msra.gmra.mxu0 %vm101_vm3, %v147_v22 }
  0xdf   :  { %1115 = vmatpush3.bf16.msra.mxu0 %v1335_v3  ;;  %1118 = vmatprep.mubr.msk.bf16.mxu0 %vm1289_vm1, %v1288_v1 }
  0xe0   :  { %1116 = vmatprep.subr.bf16.mxu0 %v1288_v1 }
  0xe3   :  { %1117 = vmatpush3.bf16.msra.mxu0 %v1349_v7 }
  0xe4   :  { %1130 = vmatprep.subr.bf16.mxu0 %v1288_v1 }
 0x19e   :  { %v185_v23 = vpop.f32.mrf.mxu0 }
 0x19f   :  { %v192_v24 = vrot.slane %v185_v23, 7 }
 0x1a0   :  { %v1104_v25 = vpop.f32.mrf.mxu0 }
 0x1a1   :  { %v194_v26 = vadd.f32 %v192_v24, %v1372_v11 }
 0x1a2   :  { %v188_v27 = vpop.f32.mrf.mxu0 }
 0x1a3   :  { %1236 = vtanh.f32 %v194_v26 }
 0x1a4   :  { %v1105_v28 = vpop.f32.mrf.mxu0 }
 0x1b0   :  { %v1237_v29 = vpop.eup %1236 }
 0x1b1   :  { %v196_v30 = vpack.c.bf16 %v1237_v29, %v1237_v29 }
 0x1b3   :  { %v198_v31 = vshrl.u32 %v196_v30, 16 }
 0x1b5   :  { %1111 = vmatmul.mubr.msk.bf16.vlgmr.msra.gmra.mxu1 %vm101_vm3, %v198_v31 }
 0x1b6   :  { %1123 = vmatpush3.bf16.msra.mxu1 %v1335_v3  ;;  %1126 = vmatprep.mubr.msk.bf16.mxu1 %vm1289_vm1, %v1288_v1 }
 0x1b7   :  { %1124 = vmatprep.subr.bf16.mxu1 %v1288_v1 }
 0x1ba   :  { %1125 = vmatpush3.bf16.msra.mxu1 %v1349_v7 }
 0x1bb   :  { %1138 = vmatprep.subr.bf16.mxu1 %v1288_v1 }
 0x275   :  { %v237_v32 = vpop.f32.mrf.mxu1 }
 0x276   :  { %v244_v33 = vrot.slane %v237_v32, 6 }
 0x277   :  { %v1112_v34 = vpop.f32.mrf.mxu1 }
 0x278   :  { %v246_v35 = vadd.f32 %v244_v33, %v1372_v11 }
 0x279   :  { %v240_v36 = vpop.f32.mrf.mxu1 }
 0x27a   :  { %1238 = vtanh.f32 %v246_v35 }
 0x27b   :  { %v1113_v37 = vpop.f32.mrf.mxu1 }
 0x287   :  { %v1239_v38 = vpop.eup %1238 }
 0x288   :  { %v248_v39 = vpack.c.bf16 %v1239_v38, %v1239_v38 }
 0x28a   :  { %v250_v40 = vrot.slane %v248_v39, 1 }
 0x28c   :  { %1119 = vmatmul.mubr.msk.bf16.vlgmr.msra.gmra.mxu0 %vm101_vm3, %v250_v40 }
 0x28d   :  { %1131 = vmatpush3.bf16.msra.mxu0 %v1335_v3  ;;  %1134 = vmatprep.mubr.msk.bf16.mxu0 %vm1289_vm1, %v1288_v1 }
 0x28e   :  { %1132 = vmatprep.subr.bf16.mxu0 %v1288_v1 }
 0x291   :  { %1133 = vmatpush3.bf16.msra.mxu0 %v1349_v7 }
 0x292   :  { %1146 = vmatprep.subr.bf16.mxu0 %v1288_v1 }
 0x34c   :  { %v288_v41 = vpop.f32.mrf.mxu0 }
 0x34d   :  { %v295_v42 = vrot.slane %v288_v41, 5 }
 0x34e   :  { %v1120_v43 = vpop.f32.mrf.mxu0 }
 0x34f   :  { %v297_v44 = vadd.f32 %v295_v42, %v1372_v11 }
 0x350   :  { %v291_v45 = vpop.f32.mrf.mxu0 }
 0x351   :  { %1240 = vtanh.f32 %v297_v44 }
 0x352   :  { %v1121_v46 = vpop.f32.mrf.mxu0 }
 0x35e   :  { %v1241_v47 = vpop.eup %1240 }
 0x35f   :  { %v299_v48 = vpack.c.bf16 %v1241_v47, %v1241_v47 }
 0x361   :  { %v301_v49 = vshrl.u32 %v299_v48, 16 }
 0x363   :  { %v303_v50 = vrot.slane %v301_v49, 1 }
 0x365   :  { %1127 = vmatmul.mubr.msk.bf16.vlgmr.msra.gmra.mxu1 %vm101_vm3, %v303_v50 }
 0x366   :  { %1139 = vmatpush3.bf16.msra.mxu1 %v1335_v3  ;;  %1142 = vmatprep.mubr.msk.bf16.mxu1 %vm1289_vm1, %v1288_v1 }
 0x367   :  { %1140 = vmatprep.subr.bf16.mxu1 %v1288_v1 }
 0x36a   :  { %1141 = vmatpush3.bf16.msra.mxu1 %v1349_v7 }
 0x36b   :  { %1154 = vmatprep.subr.bf16.mxu1 %v1288_v1 }
 0x425   :  { %v341_v51 = vpop.f32.mrf.mxu1 }
 0x426   :  { %v348_v52 = vrot.slane %v341_v51, 4 }
 0x427   :  { %v1128_v53 = vpop.f32.mrf.mxu1 }
 0x428   :  { %v350_v54 = vadd.f32 %v348_v52, %v1372_v11 }
 0x429   :  { %v344_v55 = vpop.f32.mrf.mxu1 }
 0x42a   :  { %1242 = vtanh.f32 %v350_v54 }
 0x42b   :  { %v1129_v56 = vpop.f32.mrf.mxu1 }
 0x437   :  { %v1243_v57 = vpop.eup %1242 }
 0x438   :  { %v352_v58 = vpack.c.bf16 %v1243_v57, %v1243_v57 }
 0x43a   :  { %v354_v59 = vrot.slane %v352_v58, 2 }
 0x43c   :  { %1135 = vmatmul.mubr.msk.bf16.vlgmr.msra.gmra.mxu0 %vm101_vm3, %v354_v59 }
 0x43d   :  { %1147 = vmatpush3.bf16.msra.mxu0 %v1335_v3  ;;  %1150 = vmatprep.mubr.msk.bf16.mxu0 %vm1289_vm1, %v1288_v1 }
 0x43e   :  { %1148 = vmatprep.subr.bf16.mxu0 %v1288_v1 }
 0x441   :  { %1149 = vmatpush3.bf16.msra.mxu0 %v1349_v7 }
 0x442   :  { %1162 = vmatprep.subr.bf16.mxu0 %v1288_v1 }
 0x4fc   :  { %v392_v60 = vpop.f32.mrf.mxu0 }
 0x4fd   :  { %v399_v61 = vrot.slane %v392_v60, 3 }
 0x4fe   :  { %v1136_v62 = vpop.f32.mrf.mxu0 }
 0x4ff   :  { %v401_v63 = vadd.f32 %v399_v61, %v1372_v11 }
 0x500   :  { %v395_v0 = vpop.f32.mrf.mxu0 }
 0x501   :  { %1244 = vtanh.f32 %v401_v63 }
 0x502   :  { %v1137_v2 = vpop.f32.mrf.mxu0 }
 0x50e   :  { %v1245_v4 = vpop.eup %1244 }
 0x50f   :  { %v403_v5 = vpack.c.bf16 %v1245_v4, %v1245_v4 }
 0x511   :  { %v405_v6 = vshrl.u32 %v403_v5, 16 }
 0x513   :  { %v407_v8 = vrot.slane %v405_v6, 2 }
 0x515   :  { %1143 = vmatmul.mubr.msk.bf16.vlgmr.msra.gmra.mxu1 %vm101_vm3, %v407_v8 }
 0x516   :  { %1155 = vmatpush3.bf16.msra.mxu1 %v1335_v3  ;;  %1158 = vmatprep.mubr.msk.bf16.mxu1 %vm1289_vm1, %v1288_v1 }
 0x517   :  { %1156 = vmatprep.subr.bf16.mxu1 %v1288_v1 }
 0x51a   :  { %1157 = vmatpush3.bf16.msra.mxu1 %v1349_v7 }
 0x51b   :  { %1170 = vmatprep.subr.bf16.mxu1 %v1288_v1 }
 0x5d5   :  { %v445_v9 = vpop.f32.mrf.mxu1 }
 0x5d6   :  { %v452_v10 = vrot.slane %v445_v9, 2 }
 0x5d7   :  { %v1144_v12 = vpop.f32.mrf.mxu1 }
 0x5d8   :  { %v454_v13 = vadd.f32 %v452_v10, %v1372_v11 }
 0x5d9   :  { %v448_v15 = vpop.f32.mrf.mxu1 }
 0x5da   :  { %1246 = vtanh.f32 %v454_v13 }
 0x5db   :  { %v1145_v16 = vpop.f32.mrf.mxu1 }
 0x5e7   :  { %v1247_v17 = vpop.eup %1246 }
 0x5e8   :  { %v456_v18 = vpack.c.bf16 %v1247_v17, %v1247_v17 }
 0x5ea   :  { %v458_v19 = vrot.slane %v456_v18, 3 }
 0x5ec   :  { %1151 = vmatmul.mubr.msk.bf16.vlgmr.msra.gmra.mxu0 %vm101_vm3, %v458_v19 }
 0x5ed   :  { %1163 = vmatpush3.bf16.msra.mxu0 %v1335_v3  ;;  %1166 = vmatprep.mubr.msk.bf16.mxu0 %vm1289_vm1, %v1288_v1 }
 0x5ee   :  { %1164 = vmatprep.subr.bf16.mxu0 %v1288_v1 }
 0x5f1   :  { %1165 = vmatpush3.bf16.msra.mxu0 %v1349_v7 }
 0x5f2   :  { %1178 = vmatprep.subr.bf16.mxu0 %v1288_v1 }
 0x6ac   :  { %v496_v20 = vpop.f32.mrf.mxu0 }
 0x6ad   :  { %v503_v21 = vrot.slane %v496_v20, 1 }
 0x6ae   :  { %v1152_v22 = vpop.f32.mrf.mxu0 }
 0x6af   :  { %v505_v23 = vadd.f32 %v503_v21, %v1372_v11 }
 0x6b0   :  { %v499_v24 = vpop.f32.mrf.mxu0 }
 0x6b1   :  { %1248 = vtanh.f32 %v505_v23 }
 0x6b2   :  { %v1153_v25 = vpop.f32.mrf.mxu0 }
 0x6be   :  { %v1433_v26 = vpop.eup %1248 }
 0x6bf   :  { %v507_v27 = vpack.c.bf16 %v1433_v26, %v1433_v26 }
 0x6c1   :  { %v509_v28 = vshrl.u32 %v507_v27, 16 }
 0x6c3   :  { %v511_v29 = vrot.slane %v509_v28, 3 }
 0x6c5   :  { %1159 = vmatmul.mubr.msk.bf16.vlgmr.msra.gmra.mxu1 %vm101_vm3, %v511_v29 }
 0x6c6   :  { %1171 = vmatpush3.bf16.msra.mxu1 %v1335_v3  ;;  %1174 = vmatprep.mubr.msk.bf16.mxu1 %vm1289_vm1, %v1288_v1 }
 0x6c7   :  { %1172 = vmatprep.subr.bf16.mxu1 %v1288_v1 }
 0x6ca   :  { %1173 = vmatpush3.bf16.msra.mxu1 %v1349_v7 }
 0x6cb   :  { %1186 = vmatprep.subr.bf16.mxu1 %v1288_v1 }
 0x785   :  { %v549_v11 = vpop.f32.mrf.mxu1 }
 0x786   :  { %v555_v30 = vadd.f32 %v549_v11, %v1374_v14 }
 0x787   :  { %v1160_v31 = vpop.f32.mrf.mxu1 }
 0x788   :  { %1250 = vtanh.f32 %v555_v30  ;;  %v1232_v31 = vld [vmem:[%s1509_s4 + $0x8] sm:$0xff]  }
 0x789   :  { %v552_v32 = vpop.f32.mrf.mxu1 }
 0x78a   :  { %v1233_v32 = vld [vmem:[%s1509_s4] sm:$0xff]  }
 0x78b   :  { %v1161_v33 = vpop.f32.mrf.mxu1 }
 0x795   :  { %v1251_v34 = vpop.eup %1250 }
 0x796   :  { %v557_v35 = vpack.c.bf16 %v1251_v34, %v1251_v34 }
 0x798   :  { %1167 = vmatmul.mubr.msk.bf16.vlgmr.msra.gmra.mxu0 %vm101_vm3, %v557_v35 }
 0x799   :  { %1179 = vmatpush3.bf16.msra.mxu0 %v1335_v3  ;;  %1182 = vmatprep.mubr.msk.bf16.mxu0 %vm1289_vm1, %v1288_v1 }
 0x79a   :  { %1180 = vmatprep.subr.bf16.mxu0 %v1288_v1 }
 0x79d   :  { %1181 = vmatpush3.bf16.msra.mxu0 %v1349_v7 }
 0x79e   :  { %1194 = vmatprep.subr.bf16.mxu0 %v1288_v1 }
 0x858   :  { %v595_v36 = vpop.f32.mrf.mxu0 }
 0x859   :  { %v602_v37 = vrot.slane %v595_v36, 7 }
 0x85a   :  { %v1168_v38 = vpop.f32.mrf.mxu0 }
 0x85b   :  { %v604_v39 = vadd.f32 %v602_v37, %v1374_v14 }
 0x85c   :  { %v598_v40 = vpop.f32.mrf.mxu0 }
 0x85d   :  { %1252 = vtanh.f32 %v604_v39  ;;  %v918_v40 = vrot.slane %v1433_v26, 7 }
 0x85e   :  { %v1169_v41 = vpop.f32.mrf.mxu0 }
 0x86a   :  { %v1253_v42 = vpop.eup %1252 }
 0x86b   :  { %v606_v43 = vpack.c.bf16 %v1253_v42, %v1253_v42 }
 0x86d   :  { %v608_v44 = vshrl.u32 %v606_v43, 16  ;;  %v1027_v43 = vld [vmem:[%s1510_s5] ss:$0 sm:$0xff] }
 0x86f   :  { %1175 = vmatmul.mubr.msk.bf16.vlgmr.msra.gmra.mxu1 %vm101_vm3, %v608_v44 }
 0x870   :  { %1187 = vmatpush3.bf16.msra.mxu1 %v1335_v3  ;;  %1190 = vmatprep.mubr.msk.bf16.mxu1 %vm1289_vm1, %v1288_v1 }
 0x871   :  { %1188 = vmatprep.subr.bf16.mxu1 %v1288_v1 }
 0x874   :  { %1189 = vmatpush3.bf16.msra.mxu1 %v1349_v7 }
 0x875   :  { %1202 = vmatprep.subr.bf16.mxu1 %v1288_v1 }
 0x92f   :  { %v647_v45 = vpop.f32.mrf.mxu1 }
 0x930   :  { %v654_v46 = vrot.slane %v647_v45, 6 }
 0x931   :  { %v1176_v47 = vpop.f32.mrf.mxu1 }
 0x932   :  { %v656_v48 = vadd.f32 %v654_v46, %v1374_v14 }
 0x933   :  { %v650_v49 = vpop.f32.mrf.mxu1 }
 0x934   :  { %1254 = vtanh.f32 %v656_v48 }
 0x935   :  { %v1177_v50 = vpop.f32.mrf.mxu1 }
 0x941   :  { %v1255_v51 = vpop.eup %1254 }
 0x942   :  { %v658_v52 = vpack.c.bf16 %v1255_v51, %v1255_v51 }
 0x944   :  { %v660_v53 = vrot.slane %v658_v52, 1 }
 0x946   :  { %1183 = vmatmul.mubr.msk.bf16.vlgmr.msra.gmra.mxu0 %vm101_vm3, %v660_v53 }
 0x947   :  { %1195 = vmatpush3.bf16.msra.mxu0 %v1335_v3  ;;  %1198 = vmatprep.mubr.msk.bf16.mxu0 %vm1289_vm1, %v1288_v1 }
 0x948   :  { %1196 = vmatprep.subr.bf16.mxu0 %v1288_v1 }
 0x94b   :  { %1197 = vmatpush3.bf16.msra.mxu0 %v1349_v7 }
 0x94c   :  { %1210 = vmatprep.subr.bf16.mxu0 %v1288_v1 }
 0xa06   :  { %v698_v54 = vpop.f32.mrf.mxu0 }
 0xa07   :  { %v705_v55 = vrot.slane %v698_v54, 5 }
 0xa08   :  { %v1184_v56 = vpop.f32.mrf.mxu0 }
 0xa09   :  { %v707_v57 = vadd.f32 %v705_v55, %v1374_v14 }
 0xa0a   :  { %v701_v58 = vpop.f32.mrf.mxu0 }
 0xa0b   :  { %1256 = vtanh.f32 %v707_v57 }
 0xa0c   :  { %v1185_v59 = vpop.f32.mrf.mxu0 }
 0xa18   :  { %v1257_v60 = vpop.eup %1256 }
 0xa19   :  { %v709_v61 = vpack.c.bf16 %v1257_v60, %v1257_v60 }
 0xa1b   :  { %v711_v62 = vshrl.u32 %v709_v61, 16 }
 0xa1d   :  { %v713_v63 = vrot.slane %v711_v62, 1 }
 0xa1f   :  { %1191 = vmatmul.mubr.msk.bf16.vlgmr.msra.gmra.mxu1 %vm101_vm3, %v713_v63 }
 0xa20   :  { %1203 = vmatpush3.bf16.msra.mxu1 %v1335_v3  ;;  %1206 = vmatprep.mubr.msk.bf16.mxu1 %vm1289_vm1, %v1288_v1 }
 0xa21   :  { %1204 = vmatprep.subr.bf16.mxu1 %v1288_v1 }
 0xa24   :  { %1205 = vmatpush3.bf16.msra.mxu1 %v1349_v7 }
 0xa25   :  { %1218 = vmatprep.subr.bf16.mxu1 %v1288_v1 }
 0xadf   :  { %v751_v0 = vpop.f32.mrf.mxu1 }
 0xae0   :  { %v758_v2 = vrot.slane %v751_v0, 4 }
 0xae1   :  { %v1192_v4 = vpop.f32.mrf.mxu1 }
 0xae2   :  { %v760_v5 = vadd.f32 %v758_v2, %v1374_v14 }
 0xae3   :  { %v754_v6 = vpop.f32.mrf.mxu1 }
 0xae4   :  { %1258 = vtanh.f32 %v760_v5 }
 0xae5   :  { %v1193_v8 = vpop.f32.mrf.mxu1 }
 0xaf1   :  { %v1259_v9 = vpop.eup %1258 }
 0xaf2   :  { %v762_v10 = vpack.c.bf16 %v1259_v9, %v1259_v9 }
 0xaf4   :  { %v764_v12 = vrot.slane %v762_v10, 2 }
 0xaf6   :  { %1199 = vmatmul.mubr.msk.bf16.vlgmr.msra.gmra.mxu0 %vm101_vm3, %v764_v12 }
 0xaf7   :  { %1211 = vmatpush3.bf16.msra.mxu0 %v1335_v3  ;;  %1214 = vmatprep.mubr.msk.bf16.mxu0 %vm1289_vm1, %v1288_v1 }
 0xaf8   :  { %1212 = vmatprep.subr.bf16.mxu0 %v1288_v1 }
 0xafb   :  { %1213 = vmatpush3.bf16.msra.mxu0 %v1349_v7 }
 0xbb6   :  { %v802_v13 = vpop.f32.mrf.mxu0 }
 0xbb7   :  { %v809_v15 = vrot.slane %v802_v13, 3 }
 0xbb8   :  { %v1200_v16 = vpop.f32.mrf.mxu0 }
 0xbb9   :  { %v811_v17 = vadd.f32 %v809_v15, %v1374_v14 }
 0xbba   :  { %v805_v18 = vpop.f32.mrf.mxu0 }
 0xbbb   :  { %1260 = vtanh.f32 %v811_v17 }
 0xbbc   :  { %v1201_v19 = vpop.f32.mrf.mxu0 }
 0xbc8   :  { %v1261_v20 = vpop.eup %1260 }
 0xbc9   :  { %v813_v21 = vpack.c.bf16 %v1261_v20, %v1261_v20 }
 0xbcb   :  { %v815_v22 = vshrl.u32 %v813_v21, 16 }
 0xbcd   :  { %v817_v23 = vrot.slane %v815_v22, 2 }
 0xbcf   :  { %1207 = vmatmul.mubr.msk.bf16.vlgmr.msra.gmra.mxu1 %vm101_vm3, %v817_v23 }
 0xbd0   :  { %1222 = vmatprep.mubr.msk.bf16.mxu1 %vm1289_vm1, %v1288_v1  ;;  %1219 = vmatpush3.bf16.msra.mxu1 %v1232_v31 }
 0xbd1   :  { %1220 = vmatprep.subr.bf16.mxu1 %v1288_v1 }
 0xbd4   :  { %1221 = vmatpush3.bf16.msra.mxu1 %v1233_v32 }
 0xc8f   :  { %v855_v3 = vpop.f32.mrf.mxu1 }
 0xc90   :  { %v862_v24 = vrot.slane %v855_v3, 2 }
 0xc91   :  { %v1208_v7 = vpop.f32.mrf.mxu1 }
 0xc92   :  { %v864_v25 = vadd.f32 %v862_v24, %v1374_v14 }
 0xc93   :  { %v858_v27 = vpop.f32.mrf.mxu1 }
 0xc94   :  { %1262 = vtanh.f32 %v864_v25 }
 0xc95   :  { %v1209_v28 = vpop.f32.mrf.mxu1 }
 0xca1   :  { %v1263_v29 = vpop.eup %1262 }
 0xca2   :  { %v866_v11 = vpack.c.bf16 %v1263_v29, %v1263_v29 }
 0xca4   :  { %v868_v30 = vrot.slane %v866_v11, 3 }
 0xca6   :  { %1215 = vmatmul.mubr.msk.bf16.vlgmr.msra.gmra.mxu0 %vm101_vm3, %v868_v30 }
 0xd66   :  { %v906_v33 = vpop.f32.mrf.mxu0 }
 0xd67   :  { %v913_v34 = vrot.slane %v906_v33, 1 }
 0xd68   :  { %v1216_v35 = vpop.f32.mrf.mxu0 }
 0xd69   :  { %v915_v36 = vadd.f32 %v913_v34, %v1374_v14 }
 0xd6a   :  { %v909_v37 = vpop.f32.mrf.mxu0 }
 0xd6b   :  { %1264 = vtanh.f32 %v915_v36 }
 0xd6c   :  { %v1217_v38 = vpop.f32.mrf.mxu0 }
 0xd78   :  { %v1265_v39 = vpop.eup %1264 }
 0xd79   :  { %v921_v41 = vrot.slane %v1265_v39, 6 }
 0xd7b   :  { %v924_v42 = vsel %vm923_vm4, %v918_v40, %v921_v41 }
 0xd7c   :  { %v925_v1 = vpack.c.bf16 %v924_v42, %v924_v42 }
 0xd7e   :  { %1223 = vmatmul.mubr.msk.bf16.vlgmr.msra.gmra.mxu1 %vm101_vm3, %v925_v1 }
 0xe3e   :  { %v986_v44 = vpop.f32.mrf.mxu1 }
 0xe3f   :  { %v987_v14 = vadd.f32 %v1027_v43, %v986_v44 }
 0xe40   :  { %v1224_v45 = vpop.f32.mrf.mxu1 }
 0xe41   :  { %993 = vst.msk [vmem:[#allocation2] sm:$0x3] %vm992_vm5, %v987_v14 }
 0xe42   :  { %v989_v46 = vpop.f32.mrf.mxu1 }
 0xe43   :  { %1277 = shalt.err (!%p1274_p4)
}
 0xe44   :  { %1003 = dma.vmem_to_hbm [thread:$0]  %s1001_s11, 32, %s1511_s6, [#allocation3]   ;;  %v1225_v26 = vpop.f32.mrf.mxu1 }
 0xe45   :  { %1286 = dma.done.wait [#allocation3], 32  }
 0xe46   :  { %1287 = vsyncadd [#allocation3], 4294967264 }
 0xe47   :  { %1007 = vsyncpa [#allocation3], 1 }

</bundles_post_ra>
